<compile_context>
chip_gen: v6e
topology: v6e:2x2x1
jax: 0.10.0
libtpu: 0.0.40
codegen_flags: <defaults>
</compile_context>

<pallas_src>
import functools

import jax
import jax.numpy as jnp
from jax.experimental import pallas as pl
from jax.experimental.pallas import tpu as pltpu


def _ca_kernel(x_ref, pool_ref, eh_ref, ew_ref, w1_ref, wh_ref, ww_ref, o_ref,
               *, H, W):
    # x_ref: (TB*C, H*W) in native dtype.  Everything downstream of the pools
    # is tiny, so only those small tensors are kept in f32.
    xb = x_ref[...]                                                    # (R, HW)

    # Directional average pools via one one-hot matmul (columns pre-scaled by
    # 1/W and 1/H): column h sums x over w at row h, column H+w sums x over h.
    cat = jnp.dot(xb, pool_ref[...],
                  preferred_element_type=jnp.float32)                  # (R, H+W)

    # 1x1 conv (C -> C//r) + ReLU.  Weight is block-diagonal over the TB batch
    # elements that were folded into the sublane axis.
    y = jnp.dot(w1_ref[...], cat, preferred_element_type=jnp.float32)  # (TB*Cr, H+W)
    y = jnp.maximum(y, 0.0)

    # Split along the pooled axis, F_h / F_w (C//r -> C), sigmoid (EUP slot,
    # effectively free next to the MXU work).
    s_h = jax.nn.sigmoid(
        jnp.dot(wh_ref[...], y[:, :H], preferred_element_type=jnp.float32))  # (R, H)
    s_w = jax.nn.sigmoid(
        jnp.dot(ww_ref[...], y[:, H:], preferred_element_type=jnp.float32))  # (R, W)

    # Broadcast both gates back onto the flattened spatial axis (l = h*W + w)
    # with one-hot expansion matmuls (MXU; avoids tile/repeat relayouts on the
    # XLU), cast the combined gate DOWN to the input dtype, and rescale x so
    # the big tile is never upcast.
    gate = (jnp.dot(s_h, eh_ref[...], preferred_element_type=jnp.float32) *
            jnp.dot(s_w, ew_ref[...], preferred_element_type=jnp.float32))   # (R, HW)
    o_ref[...] = xb * gate.astype(xb.dtype)


def _choose_tb(batch, channels, per_batch_bytes):
    """Batch elements per grid step.

    Aim ~1 MiB input blocks, cap 2 MiB (so in+out double-buffered stays well
    under the VMEM budget, including v7x's smaller 64 MiB VMEM), keep >=2 grid
    steps for megacore sharding when possible, and keep the sublane count
    (tb*channels) a multiple of 8 unless the block covers the full array.
    """
    target = 1 << 20
    cap = 2 << 20
    best = None
    for tb in range(1, batch + 1):
        if batch % tb:
            continue
        if tb * per_batch_bytes > cap:
            break
        if (tb * channels) % 8 != 0 and tb != batch:
            continue  # would violate the (8, 128) block constraint
        if batch >= 2 and batch // tb < 2:
            continue  # keep >=2 grid steps so both TCs get work
        if tb * per_batch_bytes <= target:
            best = tb
    if best is None:
        # Fall back to a single full-array block (block_shape == array shape,
        # always legal).
        best = batch
    return best


def ca_block(x_nchw, w1, wh, ww):
    """CA_Block forward.  x: (B,C,H,W); w1: (C//r, C); wh, ww: (C, C//r)."""
    B, C, H, W = x_nchw.shape
    Cr = w1.shape[0]
    HW = H * W
    dtype = x_nchw.dtype
    itemsize = jnp.dtype(dtype).itemsize

    TB = _choose_tb(B, C, C * HW * itemsize)
    n_steps = B // TB
    rows = TB * C

    # Lane-dense layout: rows = (b, c), lanes = h*W + w.
    x2 = x_nchw.reshape(B * C, HW)

    # One-hot pooling / expansion matrices (tiny, built once in the wrapper,
    # resident in VMEM across all grid steps).
    l_h = jnp.arange(HW, dtype=jnp.int32) // W
    l_w = jnp.arange(HW, dtype=jnp.int32) % W
    onehot_h = (l_h[:, None] == jnp.arange(H)[None, :]).astype(dtype)   # (HW, H)
    onehot_w = (l_w[:, None] == jnp.arange(W)[None, :]).astype(dtype)   # (HW, W)
    pool_mat = jnp.concatenate([onehot_h / W, onehot_w / H], axis=1)    # (HW, H+W)
    eh_mat = onehot_h.T                                                 # (H, HW)
    ew_mat = onehot_w.T                                                 # (W, HW)

    # Block-diagonal excitation weights fold TB batches into plain 2-D matmuls.
    if TB == 1:
        w1b, whb, wwb = w1, wh, ww
    else:
        eye = jnp.eye(TB, dtype=w1.dtype)
        w1b = jnp.kron(eye, w1)          # (TB*Cr, TB*C)
        whb = jnp.kron(eye, wh)          # (TB*C, TB*Cr)
        wwb = jnp.kron(eye, ww)          # (TB*C, TB*Cr)

    aux_bytes = int(pool_mat.size + eh_mat.size + ew_mat.size) * itemsize
    cost = pl.CostEstimate(
        flops=2 * (B * C) * HW * (H + W)                      # pooling matmul
        + 4 * (B * C) * HW                                    # gate expand + rescale
        + 2 * B * (Cr * C * (H + W) + C * Cr * (H + W)),      # excitation
        transcendentals=B * C * (H + W),                      # sigmoids
        bytes_accessed=2 * B * C * HW * itemsize + aux_bytes)

    out2 = pl.pallas_call(
        functools.partial(_ca_kernel, H=H, W=W),
        out_shape=jax.ShapeDtypeStruct((B * C, HW), dtype),
        grid_spec=pltpu.PrefetchScalarGridSpec(
            num_scalar_prefetch=0,
            grid=(n_steps,),
            in_specs=[
                pl.BlockSpec((rows, HW), lambda i: (i, 0)),
                pl.BlockSpec((HW, H + W), lambda i: (0, 0)),
                pl.BlockSpec((H, HW), lambda i: (0, 0)),
                pl.BlockSpec((W, HW), lambda i: (0, 0)),
                pl.BlockSpec(w1b.shape, lambda i: (0, 0)),
                pl.BlockSpec(whb.shape, lambda i: (0, 0)),
                pl.BlockSpec(wwb.shape, lambda i: (0, 0)),
            ],
            out_specs=pl.BlockSpec((rows, HW), lambda i: (i, 0)),
        ),
        compiler_params=pltpu.CompilerParams(
            dimension_semantics=("parallel",),
            vmem_limit_bytes=32 * 1024 * 1024),
        cost_estimate=cost,
    )(x2, pool_mat, eh_mat, ew_mat, w1b, whb, wwb)
    # TODO(synk): for very large H*W (where the one-hot matrices plus a full
    # (TB*C, H*W) block exceed the VMEM budget, esp. v7x's 64 MiB) add a
    # two-pass HW-tiled path: pass 1 accumulates the pools, pass 2 applies gates.
    return out2.reshape(B, C, H, W)


def _reference(x, w1, wh, ww):
    # Pure-JAX reference of the PyTorch CA_Block forward (bn unused in forward).
    B, C, H, W = x.shape
    x_h = jnp.mean(x, axis=3)                        # pool over W -> (B, C, H)
    x_w = jnp.mean(x, axis=2)                        # pool over H -> (B, C, W)
    cat = jnp.concatenate([x_h, x_w], axis=-1)       # (B, C, H+W)
    y = jax.nn.relu(jnp.einsum('rc,bcl->brl', w1, cat, precision='highest'))
    s_h = jax.nn.sigmoid(jnp.einsum('cr,brh->bch', wh, y[..., :H], precision='highest'))
    s_w = jax.nn.sigmoid(jnp.einsum('cr,brw->bcw', ww, y[..., H:], precision='highest'))
    return x * s_h[:, :, :, None] * s_w[:, :, None, :]


if __name__ == "__main__":
    key = jax.random.PRNGKey(0)
    B, C, H, W = 2, 64, 16, 16
    reduction = 16
    Cr = C // reduction

    kx, k1, kh, kw = jax.random.split(key, 4)
    x = jax.random.normal(kx, (B, C, H, W), dtype=jnp.float32)
    # 1x1 convs with bias=False are plain channel-mixing matrices.
    w1 = jax.random.normal(k1, (Cr, C), dtype=jnp.float32) * 0.1   # conv_1x1: C -> C//r
    wh = jax.random.normal(kh, (C, Cr), dtype=jnp.float32) * 0.1   # F_h: C//r -> C
    ww = jax.random.normal(kw, (C, Cr), dtype=jnp.float32) * 0.1   # F_w: C//r -> C

    out = ca_block(x, w1, wh, ww)
    jax.block_until_ready(out)

    ref = _reference(x, w1, wh, ww)
    assert jnp.allclose(out, ref, atol=1e-3, rtol=1e-3), "mismatch vs reference"
    print("KERNEL_OK")
</pallas_src>

<mosaic_0001>
module attributes {stable_mosaic.version = 11 : i64} {
  func.func @_ca_kernel(%arg0: i32, %arg1: memref<64x256xf32, #tpu.memory_space<vmem>>, %arg2: memref<256x32xf32, #tpu.memory_space<vmem>>, %arg3: memref<16x256xf32, #tpu.memory_space<vmem>>, %arg4: memref<16x256xf32, #tpu.memory_space<vmem>>, %arg5: memref<4x64xf32, #tpu.memory_space<vmem>>, %arg6: memref<64x4xf32, #tpu.memory_space<vmem>>, %arg7: memref<64x4xf32, #tpu.memory_space<vmem>>, %arg8: memref<64x256xf32, #tpu.memory_space<vmem>>) attributes {dimension_semantics = [#tpu.dimension_semantics<parallel>], iteration_bounds = array<i64: 2>, scalar_prefetch = 0 : i64, scratch_operands = 0 : i64, tpu.core_type = #tpu.core_type<tc>, window_params = [{transform_indices = @transform_0, window_bounds = array<i64: 64, 256>}, {pipeline_mode = #tpu.pipeline_mode<synchronous>, transform_indices = @transform_1, window_bounds = array<i64: 256, 32>}, {pipeline_mode = #tpu.pipeline_mode<synchronous>, transform_indices = @transform_2, window_bounds = array<i64: 16, 256>}, {pipeline_mode = #tpu.pipeline_mode<synchronous>, transform_indices = @transform_3, window_bounds = array<i64: 16, 256>}, {pipeline_mode = #tpu.pipeline_mode<synchronous>, transform_indices = @transform_4, window_bounds = array<i64: 4, 64>}, {pipeline_mode = #tpu.pipeline_mode<synchronous>, transform_indices = @transform_5, window_bounds = array<i64: 64, 4>}, {pipeline_mode = #tpu.pipeline_mode<synchronous>, transform_indices = @transform_6, window_bounds = array<i64: 64, 4>}, {transform_indices = @transform_7, window_bounds = array<i64: 64, 256>}]} {
    %c0 = arith.constant 0 : index
    %c0_0 = arith.constant 0 : index
    %0 = vector.load %arg1[%c0, %c0_0] : memref<64x256xf32, #tpu.memory_space<vmem>>, vector<64x256xf32>
    %c0_1 = arith.constant 0 : index
    %c0_2 = arith.constant 0 : index
    %1 = vector.load %arg2[%c0_1, %c0_2] : memref<256x32xf32, #tpu.memory_space<vmem>>, vector<256x32xf32>
    %cst = arith.constant dense<0.000000e+00> : vector<64x32xf32>
    %2 = tpu.matmul %0, %1, %cst {dimension_numbers = #tpu.dot_dimension_numbers<[1], [0], [0], [1], [0, 0, 1, 1], [], []>} : vector<64x256xf32>, vector<256x32xf32>, vector<64x32xf32> -> vector<64x32xf32>
    %c0_3 = arith.constant 0 : index
    %c0_4 = arith.constant 0 : index
    %3 = vector.load %arg5[%c0_3, %c0_4] : memref<4x64xf32, #tpu.memory_space<vmem>>, vector<4x64xf32>
    %cst_5 = arith.constant dense<0.000000e+00> : vector<4x32xf32>
    %4 = tpu.matmul %3, %2, %cst_5 {dimension_numbers = #tpu.dot_dimension_numbers<[1], [0], [0], [1], [0, 0, 1, 1], [], []>} : vector<4x64xf32>, vector<64x32xf32>, vector<4x32xf32> -> vector<4x32xf32>
    %cst_6 = arith.constant 0.000000e+00 : f32
    %5 = vector.broadcast %cst_6 : f32 to vector<4x32xf32>
    %6 = arith.maximumf %4, %5 : vector<4x32xf32>
    %c0_7 = arith.constant 0 : index
    %c0_8 = arith.constant 0 : index
    %7 = vector.load %arg6[%c0_7, %c0_8] : memref<64x4xf32, #tpu.memory_space<vmem>>, vector<64x4xf32>
    %8 = vector.extract_strided_slice %6 {offsets = [0, 0], sizes = [4, 16], strides = [1, 1]} : vector<4x32xf32> to vector<4x16xf32>
    %cst_9 = arith.constant dense<0.000000e+00> : vector<64x16xf32>
    %9 = tpu.matmul %7, %8, %cst_9 {dimension_numbers = #tpu.dot_dimension_numbers<[1], [0], [0], [1], [0, 0, 1, 1], [], []>} : vector<64x4xf32>, vector<4x16xf32>, vector<64x16xf32> -> vector<64x16xf32>
    %10 = arith.negf %9 : vector<64x16xf32>
    %11 = math.exp %10 : vector<64x16xf32>
    %cst_10 = arith.constant 1.000000e+00 : f32
    %12 = vector.broadcast %cst_10 : f32 to vector<64x16xf32>
    %13 = arith.addf %12, %11 : vector<64x16xf32>
    %14 = arith.divf %12, %13 : vector<64x16xf32>
    %c0_11 = arith.constant 0 : index
    %c0_12 = arith.constant 0 : index
    %15 = vector.load %arg7[%c0_11, %c0_12] : memref<64x4xf32, #tpu.memory_space<vmem>>, vector<64x4xf32>
    %16 = vector.extract_strided_slice %6 {offsets = [0, 16], sizes = [4, 16], strides = [1, 1]} : vector<4x32xf32> to vector<4x16xf32>
    %cst_13 = arith.constant dense<0.000000e+00> : vector<64x16xf32>
    %17 = tpu.matmul %15, %16, %cst_13 {dimension_numbers = #tpu.dot_dimension_numbers<[1], [0], [0], [1], [0, 0, 1, 1], [], []>} : vector<64x4xf32>, vector<4x16xf32>, vector<64x16xf32> -> vector<64x16xf32>
    %18 = arith.negf %17 : vector<64x16xf32>
    %19 = math.exp %18 : vector<64x16xf32>
    %cst_14 = arith.constant 1.000000e+00 : f32
    %20 = vector.broadcast %cst_14 : f32 to vector<64x16xf32>
    %21 = arith.addf %20, %19 : vector<64x16xf32>
    %22 = arith.divf %20, %21 : vector<64x16xf32>
    %c0_15 = arith.constant 0 : index
    %c0_16 = arith.constant 0 : index
    %23 = vector.load %arg3[%c0_15, %c0_16] : memref<16x256xf32, #tpu.memory_space<vmem>>, vector<16x256xf32>
    %cst_17 = arith.constant dense<0.000000e+00> : vector<64x256xf32>
    %24 = tpu.matmul %14, %23, %cst_17 {dimension_numbers = #tpu.dot_dimension_numbers<[1], [0], [0], [1], [0, 0, 1, 1], [], []>} : vector<64x16xf32>, vector<16x256xf32>, vector<64x256xf32> -> vector<64x256xf32>
    %c0_18 = arith.constant 0 : index
    %c0_19 = arith.constant 0 : index
    %25 = vector.load %arg4[%c0_18, %c0_19] : memref<16x256xf32, #tpu.memory_space<vmem>>, vector<16x256xf32>
    %cst_20 = arith.constant dense<0.000000e+00> : vector<64x256xf32>
    %26 = tpu.matmul %22, %25, %cst_20 {dimension_numbers = #tpu.dot_dimension_numbers<[1], [0], [0], [1], [0, 0, 1, 1], [], []>} : vector<64x16xf32>, vector<16x256xf32>, vector<64x256xf32> -> vector<64x256xf32>
    %27 = arith.mulf %24, %26 : vector<64x256xf32>
    %28 = arith.mulf %0, %27 : vector<64x256xf32>
    %c0_21 = arith.constant 0 : index
    %c0_22 = arith.constant 0 : index
    %29 = vector.load %arg8[%c0_21, %c0_22] : memref<64x256xf32, #tpu.memory_space<vmem>>, vector<64x256xf32>
    tpu.vector_store %arg8[%c0_21, %c0_22], %28 {strides = array<i32>} : memref<64x256xf32, #tpu.memory_space<vmem>>, vector<64x256xf32>,
    return
  }
  func.func @transform_0(%arg0: i32) -> (i32, i32) {
    %c0_i32 = arith.constant 0 : i32
    %c0_i32_0 = arith.constant 0 : i32
    return %arg0, %c0_i32 : i32, i32
  }
  func.func @transform_1(%arg0: i32) -> (i32, i32) {
    %c0_i32 = arith.constant 0 : i32
    %c0_i32_0 = arith.constant 0 : i32
    %c0_i32_1 = arith.constant 0 : i32
    return %c0_i32, %c0_i32_0 : i32, i32
  }
  func.func @transform_2(%arg0: i32) -> (i32, i32) {
    %c0_i32 = arith.constant 0 : i32
    %c0_i32_0 = arith.constant 0 : i32
    %c0_i32_1 = arith.constant 0 : i32
    return %c0_i32, %c0_i32_0 : i32, i32
  }
  func.func @transform_3(%arg0: i32) -> (i32, i32) {
    %c0_i32 = arith.constant 0 : i32
    %c0_i32_0 = arith.constant 0 : i32
    %c0_i32_1 = arith.constant 0 : i32
    return %c0_i32, %c0_i32_0 : i32, i32
  }
  func.func @transform_4(%arg0: i32) -> (i32, i32) {
    %c0_i32 = arith.constant 0 : i32
    %c0_i32_0 = arith.constant 0 : i32
    %c0_i32_1 = arith.constant 0 : i32
    return %c0_i32, %c0_i32_0 : i32, i32
  }
  func.func @transform_5(%arg0: i32) -> (i32, i32) {
    %c0_i32 = arith.constant 0 : i32
    %c0_i32_0 = arith.constant 0 : i32
    %c0_i32_1 = arith.constant 0 : i32
    return %c0_i32, %c0_i32_0 : i32, i32
  }
  func.func @transform_6(%arg0: i32) -> (i32, i32) {
    %c0_i32 = arith.constant 0 : i32
    %c0_i32_0 = arith.constant 0 : i32
    %c0_i32_1 = arith.constant 0 : i32
    return %c0_i32, %c0_i32_0 : i32, i32
  }
  func.func @transform_7(%arg0: i32) -> (i32, i32) {
    %c0_i32 = arith.constant 0 : i32
    %c0_i32_0 = arith.constant 0 : i32
    return %arg0, %c0_i32 : i32, i32
  }
}

</mosaic_0001>

<bundles_post_ra>
// kernel: tpu_custom_call.1
= control target key start
LH: loop header
LB: loop body
LE: loop exit
PB: predicated region body
PF: predicated region fallthrough
CT: control target
= control target key end

     0   :  { %12 = vsyncpa [#allocation3], 0  ;;  %s2158_s0 = inlined_call_operand.vmem [shape: f32[128,256], index: 0, kind: input, shape index: {}]   ;;  %s2159_s1 = inlined_call_operand.vmem [shape: f32[256,32], index: 1, kind: input, shape index: {}]   ;;  %s2160_s2 = inlined_call_operand.vmem [shape: f32[16,256], index: 2, kind: input, shape index: {}]   ;;  %s2161_s3 = inlined_call_operand.vmem [shape: f32[16,256], index: 3, kind: input, shape index: {}]   ;;  %s2162_s4 = inlined_call_operand.vmem [shape: f32[4,64], index: 4, kind: input, shape index: {}]   ;;  %s2163_s5 = inlined_call_operand.vmem [shape: f32[64,4], index: 5, kind: input, shape index: {}]   ;;  %s2164_s6 = inlined_call_operand.vmem [shape: f32[64,4], index: 6, kind: input, shape index: {}]   ;;  %s2165_s7 = inlined_call_operand.hbm [shape: f32[128,256], index: 7, kind: output, shape index: {}]  }
   0x1   :  { %14 = vsyncpa [#allocation3 + $0x1], 0  ;;  %s1717_s24 = smov 0   ;;  %s1719_s25 = smov 0  }
   0x2   :  { %s1721_s26 = smov 0   ;;  %s1723_s27 = smov 0  }
   0x3 LB: > { %s1738_s28 = sadd.s32 4294967295, %s1669_s27   ;;  %s1299_s29 = sadd.s32 4294967294, %s1669_s27   ;;  %s1669_s27 = sphi %s1723_s27, %s2171_s27   ;;  %s1665_s26 = sphi %s1721_s26, %s2170_s26   ;;  %s1661_s25 = sphi %s1719_s25, %s2169_s25   ;;  %s1657_s24 = sphi %s1717_s24, %s2168_s24  }
   0x4   : > { %s1742_s30 = sadd.s32 1, %s1669_s27   ;;  %s179_s8 = sadd.s32 1, %s1665_s26 }
   0x5   : > { %s176_s9 = ssub.s32 %s1669_s27, %s1742_s30  ;;  %p189_p0 = scmp.ne.s32.totalorder %s1665_s26, %s1661_s25 }
   0x6   : > { %p177_p1 = scmp.eq.s32.totalorder %s176_s9, 0  ;;  %p190_p2 = scmp.eq.s32.totalorder %s1738_s28, 1 }
   0x7   : > { %p195_p3 = scmp.ne.s32.totalorder %s1661_s25, %s1657_s24  ;;  %p196_p4 = scmp.eq.s32.totalorder %s1299_s29, 1 }
   0x8   : > { %s1753_s10 = scalar_select %p177_p1, %s1665_s26, %s179_s8  }
   0x9   : > { %p1755_p5 = por %p190_p2, %p189_p0  ;;  %p1759_p6 = por %p196_p4, %p195_p3 }
   0xa   : > { %p1302_p7 = scmp.ge.s32.totalorder %s1669_s27, 1  ;;  %p242_p8 = scmp.lt.s32.totalorder %s1669_s27, 3 }
   0xc   : > { %p243_p9 = pnand %p1302_p7, %p242_p8 }
   0xd   : > { %s1304_s19 = sshll.u32 (!%p243_p9), %s1738_s28, 3  ;;  %s1673_s21 = smov (!%p243_p9), 112  }
   0xe   : > { %246 = sbr.rel (%p243_p9) target bundleno = 1068 (0x42c), region = 48  ;;  %p276_p10 = scmp.lt.s32.totalorder (!%p243_p9), %s1304_s19, 15 }
   0xf   : > { %s272_s8 = sand.u32 (!%p243_p9), 1, %s1661_s25   ;;  %s1366_s13 = sshll.u32 (!%p243_p9), %s1738_s28, 11 }
  0x10   : > { %s1303_s9 = sshll.u32 (!%p243_p9), %s272_s8, 7  ;;  %s2118_s28 = scalar_lea.sflag (!%p243_p9), [#allocation3], %s272_s8 }
  0x11   : > { %s1674_s18 = smov (!%p243_p9), [#allocation2]  }
  0x12   : > { %s1613_s20 = sshll.u32 (!%p243_p9), %s1674_s18, 4  ;;  %s1614_s20 = int_to_ptr.vmem [resolvable:$false] %s1613_s20 }
  0x13   : > { %v330_v0 = vld [vmem:[%s2159_s1 + $0xf8] sm:$0xff]  ;;  %v329_v2 = vld [vmem:[%s2159_s1 + $0xf0] sm:$0xff]  ;;  %v328_v4 = vld [vmem:[%s2159_s1 + $0xe8] sm:$0xff]  ;;  %s2173_s19 = smov (!%p276_p10, %s1304_s19), 15  ;;  %v1671_v48 = vmov 0.0   ;;  %vm1672_vm0 = vmmov 0  }
  0x14   : > { %v314_v1 = vld [vmem:[%s2159_s1 + $0x78] sm:$0xff]  ;;  %1367 = vmatprep.subr.mxu0 %v330_v0  ;;  %v313_v3 = vld [vmem:[%s2159_s1 + $0x70] sm:$0xff]  ;;  %v312_v5 = vld [vmem:[%s2159_s1 + $0x68] sm:$0xff]  ;;  %s1364_s16 = sshll.u32 %s2173_s19, 4  ;;  %1450 = vmatprep.subr.mxu1 %v1671_v48  ;;  %vm437_vm1 = vcmask 523264   ;;  %vm520_vm2 = vcmask 31744  }
  0x15   : > { %1368 = vmatpush3.msra.mxu0 %v314_v1  ;;  %v327_v6 = vld [vmem:[%s2159_s1 + $0xe0] sm:$0xff]  ;;  %v326_v8 = vld [vmem:[%s2159_s1 + $0xd8] sm:$0xff]  ;;  %s1799_s29 = scalar_lea.vmem %s2158_s0, %s1364_s16  ;;  %v325_v10 = vld [vmem:[%s2159_s1 + $0xd0] sm:$0xff]  ;;  %1466 = vmatprep.mubr.msk.f32.mxu1 %vm1672_vm0, %v1671_v48  ;;  %vm545_vm3 = vcmask 1043456   ;;  %vm895_vm4 = vcmask 130048   ;;  %s2073_s19 = scalar_lea.vmem [#allocation2], %s1303_s9 }
  0x16   : > { %1369 = vmatprep.subr.mxu0 %v329_v2  ;;  %v311_v7 = vld [vmem:[%s2159_s1 + $0x60] sm:$0xff]  ;;  %v310_v9 = vld [vmem:[%s2159_s1 + $0x58] sm:$0xff]  ;;  %v309_v11 = vld [vmem:[%s2159_s1 + $0x50] sm:$0xff]  ;;  %s1237_s14 = sshll.u32 %s2073_s19, 4  ;;  %s2109_s16 = scalar_lea.hbm %s2165_s7, %s1366_s13  ;;  %s2111_s14 = int_to_ptr.vmem [resolvable:$true] %s1237_s14 }
  0x17   : > { %1370 = vmatpush3.msra.mxu0 %v313_v3  ;;  %v324_v12 = vld [vmem:[%s2159_s1 + $0xc8] sm:$0xff]  ;;  %v323_v15 = vld [vmem:[%s2159_s1 + $0xc0] sm:$0xff]  ;;  %v322_v17 = vld [vmem:[%s2159_s1 + $0xb8] sm:$0xff]  ;;  %s1609_s17 = scalar_lea.vmem %s2111_s14, 2048  ;;  %p1616_p0 = scmp.lt.s32.totalorder %s2111_s14, %s1614_s20 }
  0x18   : > { %1371 = vmatprep.subr.mxu0 %v328_v4  ;;  %v1811_v13 = vld [vmem:[%s1799_s29 + $0x8] sm:$0xff]  ;;  %v307_v16 = vld [vmem:[%s2159_s1 + $0x40] sm:$0xff]  ;;  %v306_v18 = vld [vmem:[%s2159_s1 + $0x38] sm:$0xff]  ;;  %p1610_p11 = scmp.ne.s32.totalorder %s2111_s14, %s1609_s17 }
  0x19   : > { %1372 = vmatpush3.msra.mxu0 %v312_v5  ;;  %v308_v14 = vld [vmem:[%s2159_s1 + $0x48] sm:$0xff]  ;;  %395 = vmatprep.mubr.f32.mxu0 %v1811_v13  ;;  %v321_v19 = vld [vmem:[%s2159_s1 + $0xb0] sm:$0xff]  ;;  %v319_v23 = vld [vmem:[%s2159_s1 + $0xa0] sm:$0xff] }
  0x1a   : > { %1373 = vmatprep.subr.mxu0 %v327_v6  ;;  %v305_v20 = vld [vmem:[%s2159_s1 + $0x30] sm:$0xff]  ;;  %v320_v21 = vld [vmem:[%s2159_s1 + $0xa8] sm:$0xff]  ;;  %v303_v24 = vld [vmem:[%s2159_s1 + $0x20] sm:$0xff]  ;;  %p1611_p12 = pnand %p1610_p11, %p1755_p5 }
  0x1b   : > { %1374 = vmatpush3.msra.mxu0 %v311_v7  ;;  %v304_v22 = vld [vmem:[%s2159_s1 + $0x28] sm:$0xff]  ;;  %v318_v25 = vld [vmem:[%s2159_s1 + $0x98] sm:$0xff]  ;;  %v317_v27 = vld [vmem:[%s2159_s1 + $0x90] sm:$0xff] }
  0x1c   : > { %1375 = vmatprep.subr.mxu0 %v326_v8  ;;  %v302_v26 = vld [vmem:[%s2159_s1 + $0x18] sm:$0xff]  ;;  %v301_v28 = vld [vmem:[%s2159_s1 + $0x10] sm:$0xff]  ;;  %v316_v29 = vld [vmem:[%s2159_s1 + $0x88] sm:$0xff]  ;;  %p1612_p13 = pneg %p1611_p12 }
  0x1d   : > { %1376 = vmatpush3.msra.mxu0 %v310_v9  ;;  %v300_v30 = vld [vmem:[%s2159_s1 + $0x8] sm:$0xff]  ;;  %v315_v31 = vld [vmem:[%s2159_s1 + $0x80] sm:$0xff]  ;;  %v1875_v34 = vld [vmem:[%s1799_s29 + $0x18] sm:$0xff] }
  0x1e   : > { %1377 = vmatprep.subr.mxu0 %v325_v10  ;;  %v299_v32 = vld [vmem:[%s2159_s1] sm:$0xff]  ;;  %v1880_v35 = vld [vmem:[%s1799_s29 + $0x10] sm:$0xff]  ;;  %v1883_v36 = vld [vmem:[%s1799_s29 + $0x28] sm:$0xff] }
  0x1f   : > { %1378 = vmatpush3.msra.mxu0 %v309_v11  ;;  %v1872_v33 = vld [vmem:[%s1799_s29] sm:$0xff]  ;;  %v1891_v38 = vld [vmem:[%s1799_s29 + $0x38] sm:$0xff]  ;;  %v1896_v39 = vld [vmem:[%s1799_s29 + $0x30] sm:$0xff] }
  0x20   : > { %1379 = vmatprep.subr.mxu0 %v324_v12  ;;  %v1888_v37 = vld [vmem:[%s1799_s29 + $0x20] sm:$0xff]  ;;  %v1899_v40 = vld [vmem:[%s1799_s29 + $0x48] sm:$0xff]  ;;  %v1907_v42 = vld [vmem:[%s1799_s29 + $0x58] sm:$0xff] }
  0x21   : > { %1380 = vmatpush3.msra.mxu0 %v308_v14  ;;  %v1904_v41 = vld [vmem:[%s1799_s29 + $0x40] sm:$0xff]  ;;  %v1912_v43 = vld [vmem:[%s1799_s29 + $0x50] sm:$0xff]  ;;  %v1915_v44 = vld [vmem:[%s1799_s29 + $0x68] sm:$0xff] }
  0x22   : > { %1381 = vmatprep.subr.mxu0 %v323_v15  ;;  %v1920_v45 = vld [vmem:[%s1799_s29 + $0x60] sm:$0xff]  ;;  %v1923_v46 = vld [vmem:[%s1799_s29 + $0x78] sm:$0xff]  ;;  %v1928_v47 = vld [vmem:[%s1799_s29 + $0x70] sm:$0xff] }
  0x23   : > { %1382 = vmatpush3.msra.mxu0 %v307_v16  ;;  %v436_v9 = vld [vmem:[%s2162_s4] sm:$0xf]  ;;  %v513_v15 = vld [vmem:[%s2163_s5 + $0x8] sm:$0xff]  ;;  %v514_v16 = vld [vmem:[%s2163_s5 + $0x10] sm:$0xff] }
  0x24   : > { %1383 = vmatprep.subr.mxu0 %v322_v17  ;;  %v512_v10 = vld [vmem:[%s2163_s5] sm:$0xff]  ;;  %v515_v17 = vld [vmem:[%s2163_s5 + $0x18] sm:$0xff] }
  0x25   : > { %1384 = vmatpush3.msra.mxu0 %v306_v18  ;;  %v516_v18 = vld [vmem:[%s2163_s5 + $0x20] sm:$0xff] }
  0x26   : > { %1385 = vmatprep.subr.mxu0 %v321_v19  ;;  %v517_v19 = vld [vmem:[%s2163_s5 + $0x28] sm:$0xff] }
  0x27   : > { %1386 = vmatpush3.msra.mxu0 %v305_v20  ;;  %v518_v20 = vld [vmem:[%s2163_s5 + $0x30] sm:$0xff] }
  0x28   : > { %1387 = vmatprep.subr.mxu0 %v320_v21  ;;  %v519_v21 = vld [vmem:[%s2163_s5 + $0x38] sm:$0xff] }
  0x29   : > { %1388 = vmatpush3.msra.mxu0 %v304_v22  ;;  %v702_v22 = vld [vmem:[%s2164_s6] sm:$0xff] }
  0x2a   : > { %1389 = vmatprep.subr.mxu0 %v319_v23 }
  0x2b   : > { %1390 = vmatpush3.msra.mxu0 %v303_v24  ;;  %v703_v24 = vld [vmem:[%s2164_s6 + $0x8] sm:$0xff] }
  0x2c   : > { %1391 = vmatprep.subr.mxu0 %v318_v25  ;;  %v704_v25 = vld [vmem:[%s2164_s6 + $0x10] sm:$0xff] }
  0x2d   : > { %1392 = vmatpush3.msra.mxu0 %v302_v26  ;;  %v705_v26 = vld [vmem:[%s2164_s6 + $0x18] sm:$0xff] }
  0x2e   : > { %1393 = vmatprep.subr.mxu0 %v317_v27  ;;  %v706_v27 = vld [vmem:[%s2164_s6 + $0x20] sm:$0xff] }
  0x2f   : > { %1394 = vmatpush3.msra.mxu0 %v301_v28  ;;  %v707_v28 = vld [vmem:[%s2164_s6 + $0x28] sm:$0xff] }
  0x30   : > { %1395 = vmatprep.subr.mxu0 %v316_v29  ;;  %v708_v29 = vld [vmem:[%s2164_s6 + $0x30] sm:$0xff] }
  0x31   : > { %1396 = vmatpush3.msra.mxu0 %v300_v30  ;;  %v709_v30 = vld [vmem:[%s2164_s6 + $0x38] sm:$0xff] }
  0x32   : > { %1397 = vmatprep.subr.mxu0 %v315_v31  ;;  %v894_v31 = vld [vmem:[%s2160_s2 + $0x18] sm:$0xff] }
  0x33   : > { %1398 = vmatpush3.msra.mxu0 %v299_v32  ;;  %v893_v32 = vld [vmem:[%s2160_s2 + $0x10] sm:$0xff] }
  0x34   : > { %396 = vmatmul.mubr.f32.vlgmr.msra.gmra.mxu0 %v1872_v33 }
  0x35   : > { %400 = vmatprep.mubr.f32.mxu0 %v1875_v34 }
  0x38   : > { %401 = vmatmul.mubr.f32.gmra.mxu0 %v1880_v35 }
  0x39   : > { %405 = vmatprep.mubr.f32.mxu0 %v1883_v36 }
  0x3c   : > { %406 = vmatmul.mubr.f32.gmra.mxu0 %v1888_v37 }
  0x3d   : > { %410 = vmatprep.mubr.f32.mxu0 %v1891_v38 }
  0x40   : > { %411 = vmatmul.mubr.f32.gmra.mxu0 %v1896_v39 }
  0x41   : > { %415 = vmatprep.mubr.f32.mxu0 %v1899_v40 }
  0x44   : > { %416 = vmatmul.mubr.f32.gmra.mxu0 %v1904_v41 }
  0x45   : > { %420 = vmatprep.mubr.f32.mxu0 %v1907_v42 }
  0x48   : > { %421 = vmatmul.mubr.f32.gmra.mxu0 %v1912_v43 }
  0x49   : > { %425 = vmatprep.mubr.f32.mxu0 %v1915_v44 }
  0x4c   : > { %426 = vmatmul.mubr.f32.gmra.mxu0 %v1920_v45 }
  0x4d   : > { %430 = vmatprep.mubr.f32.mxu0 %v1923_v46 }
  0x50   : > { %431 = vmatmul.mubr.f32.gmra.mxu0 %v1928_v47 }
  0x51   : > { %1125 = vmatprep.mubr.f32.mxu0 %v1671_v48 }
  0xf4   : > { %v1399_v49 = vpop.f32.mrf.mxu0 }
  0xf6   : > { %v1400_v50 = vpop.f32.mrf.mxu0 }
  0xf7   : > { %v1401_v8 = vadd.f32 %v1400_v50, %v1399_v49  ;;  %v892_v49 = vld [vmem:[%s2160_s2 + $0x8] sm:$0xff]  ;;  %v891_v50 = vld [vmem:[%s2160_s2] sm:$0xff] }
  0xf8   : > { %v1402_v51 = vpop.f32.mrf.mxu0 }
  0xfa   : > { %v1403_v52 = vpop.f32.mrf.mxu0 }
  0xfb   : > { %v1404_v7 = vadd.f32 %v1403_v52, %v1402_v51 }
  0xfc   : > { %v1405_v53 = vpop.f32.mrf.mxu0 }
  0xfe   : > { %v1406_v54 = vpop.f32.mrf.mxu0 }
  0xff   : > { %v1407_v6 = vadd.f32 %v1406_v54, %v1405_v53 }
 0x100   : > { %v1408_v55 = vpop.f32.mrf.mxu0 }
 0x102   : > { %v1409_v56 = vpop.f32.mrf.mxu0 }
 0x103   : > { %v1410_v5 = vadd.f32 %v1409_v56, %v1408_v55 }
 0x104   : > { %v1411_v57 = vpop.f32.mrf.mxu0 }
 0x106   : > { %v1412_v58 = vpop.f32.mrf.mxu0 }
 0x107   : > { %v1413_v4 = vadd.f32 %v1412_v58, %v1411_v57 }
 0x108   : > { %v1414_v59 = vpop.f32.mrf.mxu0 }
 0x10a   : > { %v1415_v60 = vpop.f32.mrf.mxu0 }
 0x10b   : > { %v1416_v3 = vadd.f32 %v1415_v60, %v1414_v59 }
 0x10c   : > { %v1417_v61 = vpop.f32.mrf.mxu0 }
 0x10e   : > { %v1418_v62 = vpop.f32.mrf.mxu0 }
 0x10f   : > { %v1419_v2 = vadd.f32 %v1418_v62, %v1417_v61 }
 0x110   : > { %v1420_v63 = vpop.f32.mrf.mxu0 }
 0x112   : > { %v1421_v0 = vpop.f32.mrf.mxu0 }
 0x113   : > { %v1422_v1 = vadd.f32 %v1421_v0, %v1420_v63 }
 0x115   : > { %1451 = vmatpush3.msra.mxu1 %v1422_v1 }
 0x116   : > { %1452 = vmatprep.subr.mxu1 %v1671_v48 }
 0x117   : > { %1453 = vmatpush3.msra.mxu1 %v1419_v2  ;;  %v1036_v2 = vld [vmem:[%s2161_s3 + $0x18] sm:$0xff] }
 0x118   : > { %1454 = vmatprep.subr.mxu1 %v1671_v48  ;;  %1089 = vmatprep.subr.mxu0 %v1036_v2 }
 0x119   : > { %1455 = vmatpush3.msra.mxu1 %v1416_v3 }
 0x11a   : > { %1456 = vmatprep.subr.mxu1 %v1671_v48 }
 0x11b   : > { %1457 = vmatpush3.msra.mxu1 %v1413_v4 }
 0x11c   : > { %1458 = vmatprep.subr.mxu1 %v1671_v48 }
 0x11d   : > { %1459 = vmatpush3.msra.mxu1 %v1410_v5  ;;  %v1035_v5 = vld [vmem:[%s2161_s3 + $0x10] sm:$0xff] }
 0x11e   : > { %1460 = vmatprep.subr.mxu1 %v1671_v48  ;;  %1090 = vmatpush1.msra.mxu0 %v1035_v5 }
 0x11f   : > { %1461 = vmatpush3.msra.mxu1 %v1407_v6 }
 0x120   : > { %1462 = vmatprep.subr.mxu1 %v1671_v48 }
 0x121   : > { %1463 = vmatpush3.msra.mxu1 %v1404_v7 }
 0x122   : > { %1464 = vmatprep.subr.mxu1 %v1671_v48 }
 0x123   : > { %1465 = vmatpush3.msra.mxu1 %v1401_v8  ;;  %v1034_v8 = vld [vmem:[%s2161_s3 + $0x8] sm:$0xff] }
 0x124   : > { %1467 = vmatmul.mubr.msk.f32.vlgmr.msra.gmra.mxu1 %vm437_vm1, %v436_v9  ;;  %1091 = vmatprep.subr.mxu0 %v1034_v8  ;;  %v1033_v9 = vld [vmem:[%s2161_s3] sm:$0xff] }
 0x125   : > { %1471 = vmatprep.mubr.msk.f32.mxu1 %vm520_vm2, %v512_v10  ;;  %1092 = vmatpush1.msra.mxu0 %v1033_v9 }
 0x1e4   : > { %v507_v11 = vpop.f32.mrf.mxu1 }
 0x1e5   : > { %v511_v12 = vmax.f32 %v507_v11, 0.0 }
 0x1e6   : > { %v1468_v14 = vpop.f32.mrf.mxu1 }
 0x1e7   : > { %1469 = vmatprep.subr.msk.mxu1 %vm545_vm3, %v511_v12  ;;  %710 = vrot.lane.b32.xlu0 %v511_v12, %s1673_s21  ;;  %s1615_s21 = scalar_lea.vmem %s1614_s20, 4096 }
 0x1e8   : > { %1470 = vmatpush3.msk.msra.mxu1 %vm545_vm3, %v511_v12  ;;  %p1617_p1 = scmp.lt.s32.totalorder %s1615_s21, %s1609_s17 }
 0x1e9   : > { %1472 = vmatmul.mubr.msk.f32.vlgmr.msra.gmra.mxu1 %vm520_vm2, %v513_v15 }
 0x1ea   : > { %1474 = vmatprep.mubr.msk.f32.mxu1 %vm520_vm2, %v514_v16  ;;  %p1618_p2 = por %p1617_p1, %p1616_p0 }
 0x1ec   : > { %p1619_p3 = pnand %p1618_p2, %p1612_p13 }
 0x1ed   : > { %1475 = vmatmul.mubr.msk.f32.gmra.mxu1 %vm520_vm2, %v515_v17 }
 0x1ee   : > { %1477 = vmatprep.mubr.msk.f32.mxu1 %vm520_vm2, %v516_v18 }
 0x1f1   : > { %1478 = vmatmul.mubr.msk.f32.gmra.mxu1 %vm520_vm2, %v517_v19 }
 0x1f2   : > { %1480 = vmatprep.mubr.msk.f32.mxu1 %vm520_vm2, %v518_v20 }
 0x1f5   : > { %1481 = vmatmul.mubr.msk.f32.gmra.mxu1 %vm520_vm2, %v519_v21 }
 0x1f6   : > { %1485 = vmatprep.mubr.msk.f32.mxu1 %vm520_vm2, %v702_v22 }
 0x259   : > { %v711_v23 = vpop.permute.xlu0 %710 }
 0x25a   : > { %1483 = vmatprep.subr.msk.mxu1 %vm545_vm3, %v711_v23 }
 0x25b   : > { %1484 = vmatpush3.msk.msra.mxu1 %vm545_vm3, %v711_v23 }
 0x25c   : > { %1486 = vmatmul.mubr.msk.f32.vlgmr.msra.gmra.mxu1 %vm520_vm2, %v703_v24  ;;  %948 = vmatprep.subr.mxu1 %v894_v31 }
 0x25d   : > { %1488 = vmatprep.mubr.msk.f32.mxu1 %vm520_vm2, %v704_v25  ;;  %949 = vmatpush1.msra.mxu1 %v893_v32 }
 0x25e   : > { %950 = vmatprep.subr.mxu1 %v892_v49 }
 0x25f   : > { %951 = vmatpush1.msra.mxu1 %v891_v50 }
 0x260   : > { %1489 = vmatmul.mubr.msk.f32.gmra.mxu1 %vm520_vm2, %v705_v26  ;;  %1497 = vmatprep.subr.mxu1 %v1036_v2 }
 0x261   : > { %1491 = vmatprep.mubr.msk.f32.mxu1 %vm520_vm2, %v706_v27 }
 0x264   : > { %1492 = vmatmul.mubr.msk.f32.gmra.mxu1 %vm520_vm2, %v707_v28 }
 0x265   : > { %1494 = vmatprep.mubr.msk.f32.mxu1 %vm520_vm2, %v708_v29 }
 0x268   : > { %1495 = vmatmul.mubr.msk.f32.gmra.mxu1 %vm520_vm2, %v709_v30 }
 0x269   : > { %984 = vmatprep.mubr.f32.mxu1 %v1671_v48 }
 0x2a9   : > { %v1473_v51 = vpop.f32.mrf.mxu1 }
 0x2aa   : > { %v1318_v52 = vmul.f32 -1.442695, %v1473_v51 }
 0x2ab   : > { %v615_v53 = vpop.f32.mrf.mxu1 }
 0x2ac   : > { %1545 = vpow2.f32 %v1318_v52  ;;  %v1317_v54 = vmul.f32 -1.442695, %v615_v53 }
 0x2ad   : > { %v1476_v55 = vpop.f32.mrf.mxu1 }
 0x2ae   : > { %1547 = vpow2.f32 %v1317_v54  ;;  %v1320_v57 = vmul.f32 -1.442695, %v1476_v55 }
 0x2af   : > { %v625_v56 = vpop.f32.mrf.mxu1 }
 0x2b0   : > { %v1319_v58 = vmul.f32 -1.442695, %v625_v56 }
 0x2b1   : > { %v1479_v59 = vpop.f32.mrf.mxu1 }
 0x2b2   : > { %1549 = vpow2.f32 %v1319_v58  ;;  %v1322_v63 = vmul.f32 -1.442695, %v1479_v59 }
 0x2b3   : > { %v635_v60 = vpop.f32.mrf.mxu1  ;;  %1551 = vpow2.f32 %v1320_v57 }
 0x2b4   : > { %v1321_v61 = vmul.f32 -1.442695, %v635_v60 }
 0x2b5   : > { %v1482_v62 = vpop.f32.mrf.mxu1 }
 0x2b6   : > { %1553 = vpow2.f32 %v1321_v61  ;;  %v1324_v11 = vmul.f32 -1.442695, %v1482_v62 }
 0x2b7   : > { %v645_v0 = vpop.f32.mrf.mxu1  ;;  %1555 = vpow2.f32 %v1322_v63 }
 0x2b8   : > { %v1323_v4 = vmul.f32 -1.442695, %v645_v0 }
 0x2b9   : > { %v1546_v1 = vpop.eup %1545 }
 0x2ba   : > { %v679_v6 = vadd.f32 1.0, %v1546_v1 }
 0x2bb   : > { %v1548_v3 = vpop.eup %1547 }
 0x2bc   : > { %v678_v7 = vadd.f32 1.0, %v1548_v3 }
 0x2be   : > { %1557 = vrcp.f32 %v678_v7 }
 0x2bf   : > { %v1550_v10 = vpop.eup %1549  ;;  %1559 = vpow2.f32 %v1323_v4 }
 0x2c0   : > { %1561 = vrcp.f32 %v679_v6  ;;  %v680_v12 = vadd.f32 1.0, %v1550_v10  ;;  %v1552_v14 = vpop.eup %1551 }
 0x2c1   : > { %1563 = vpow2.f32 %v1324_v11  ;;  %v681_v15 = vadd.f32 1.0, %v1552_v14 }
 0x2c2   : > { %1565 = vrcp.f32 %v680_v12 }
 0x2c3   : > { %v1554_v16 = vpop.eup %1553  ;;  %1567 = vrcp.f32 %v681_v15 }
 0x2c4   : > { %v682_v17 = vadd.f32 1.0, %v1554_v16  ;;  %v1556_v18 = vpop.eup %1555 }
 0x2c5   : > { %v683_v21 = vadd.f32 1.0, %v1556_v18 }
 0x2c6   : > { %1569 = vrcp.f32 %v682_v17 }
 0x2c7   : > { %1571 = vrcp.f32 %v683_v21 }
 0x2cb   : > { %v1558_v19 = vpop.eup %1557 }
 0x2cc   : > { %v1560_v20 = vpop.eup %1559  ;;  %1342 = vmatmul.mubr.msk.f32.vlgmr.msra.gmra.mxu1 %vm895_vm4, %v1558_v19 }
 0x2cd   : > { %v1562_v22 = vpop.eup %1561  ;;  %990 = vmatprep.mubr.f32.mxu1 %v1671_v48  ;;  %1499 = vmatpush1.msra.mxu1 %v1035_v5  ;;  %v684_v24 = vadd.f32 1.0, %v1560_v20 }
 0x2ce   : > { %1498 = vmatprep.subr.mxu1 %v1034_v8  ;;  %v1564_v23 = vpop.eup %1563 }
 0x2cf   : > { %1500 = vmatpush1.msra.mxu1 %v1033_v9  ;;  %v1566_v25 = vpop.eup %1565  ;;  %v685_v26 = vadd.f32 1.0, %v1564_v23  ;;  %1573 = vrcp.f32 %v684_v24 }
 0x2d0   : > { %1343 = vmatmul.mubr.msk.f32.gmra.mxu1 %vm895_vm4, %v1562_v22  ;;  %v1568_v27 = vpop.eup %1567 }
 0x2d1   : > { %996 = vmatprep.mubr.f32.mxu1 %v1671_v48  ;;  %1575 = vrcp.f32 %v685_v26 }
 0x2d3   : > { %v1570_v28 = vpop.eup %1569 }
 0x2d4   : > { %1344 = vmatmul.mubr.msk.f32.gmra.mxu1 %vm895_vm4, %v1566_v25  ;;  %v1572_v29 = vpop.eup %1571 }
 0x2d5   : > { %1002 = vmatprep.mubr.f32.mxu1 %v1671_v48 }
 0x2d8   : > { %1345 = vmatmul.mubr.msk.f32.gmra.mxu1 %vm895_vm4, %v1568_v27 }
 0x2d9   : > { %1008 = vmatprep.mubr.f32.mxu1 %v1671_v48 }
 0x2dc   : > { %1346 = vmatmul.mubr.msk.f32.gmra.mxu1 %vm895_vm4, %v1570_v28  ;;  %v1574_v30 = vpop.eup %1573 }
 0x2dd   : > { %1014 = vmatprep.mubr.f32.mxu1 %v1671_v48 }
 0x2de   : > { %v1576_v31 = vpop.eup %1575 }
 0x2e0   : > { %1347 = vmatmul.mubr.msk.f32.gmra.mxu1 %vm895_vm4, %v1572_v29 }
 0x2e1   : > { %1020 = vmatprep.mubr.f32.mxu1 %v1671_v48 }
 0x2e4   : > { %1348 = vmatmul.mubr.msk.f32.gmra.mxu1 %vm895_vm4, %v1574_v30 }
 0x2e5   : > { %1026 = vmatprep.mubr.f32.mxu1 %v1671_v48 }
 0x2e8   : > { %1349 = vmatmul.mubr.msk.f32.gmra.mxu1 %vm895_vm4, %v1576_v31 }
 0x2e9   : > { %1167 = vmatprep.mubr.f32.mxu1 %v1671_v48 }
 0x31c   : > { %v1487_v32 = vpop.f32.mrf.mxu1 }
 0x31d   : > { %v1335_v49 = vmul.f32 -1.442695, %v1487_v32 }
 0x31e   : > { %v804_v50 = vpop.f32.mrf.mxu1 }
 0x31f   : > { %v1334_v51 = vmul.f32 -1.442695, %v804_v50  ;;  %1577 = vpow2.f32 %v1335_v49 }
 0x320   : > { %v1490_v52 = vpop.f32.mrf.mxu1 }
 0x321   : > { %1579 = vpow2.f32 %v1334_v51  ;;  %v1337_v56 = vmul.f32 -1.442695, %v1490_v52 }
 0x322   : > { %v814_v53 = vpop.f32.mrf.mxu1 }
 0x323   : > { %v1336_v54 = vmul.f32 -1.442695, %v814_v53 }
 0x324   : > { %v1493_v55 = vpop.f32.mrf.mxu1 }
 0x325   : > { %1581 = vpow2.f32 %v1336_v54  ;;  %v1339_v61 = vmul.f32 -1.442695, %v1493_v55 }
 0x326   : > { %v824_v57 = vpop.f32.mrf.mxu1  ;;  %1583 = vpow2.f32 %v1337_v56 }
 0x327   : > { %v1338_v59 = vmul.f32 -1.442695, %v824_v57 }
 0x328   : > { %v1496_v58 = vpop.f32.mrf.mxu1 }
 0x329   : > { %v1341_v60 = vmul.f32 -1.442695, %v1496_v58 }
 0x32a   : > { %v834_v63 = vpop.f32.mrf.mxu1 }
 0x32b   : > { %1585 = vpow2.f32 %v1341_v60  ;;  %v1340_v2 = vmul.f32 -1.442695, %v834_v63 }
 0x32c   : > { %v1578_v62 = vpop.eup %1577  ;;  %1587 = vpow2.f32 %v1338_v59 }
 0x32d   : > { %1589 = vpow2.f32 %v1339_v61  ;;  %v868_v3 = vadd.f32 1.0, %v1578_v62 }
 0x32e   : > { %v1580_v0 = vpop.eup %1579 }
 0x32f   : > { %v867_v1 = vadd.f32 1.0, %v1580_v0 }
 0x331   : > { %1591 = vrcp.f32 %v867_v1 }
 0x332   : > { %v1582_v4 = vpop.eup %1581  ;;  %1593 = vpow2.f32 %v1340_v2 }
 0x333   : > { %1595 = vrcp.f32 %v868_v3  ;;  %v869_v5 = vadd.f32 1.0, %v1582_v4  ;;  %v1584_v6 = vpop.eup %1583 }
 0x334   : > { %v870_v8 = vadd.f32 1.0, %v1584_v6 }
 0x335   : > { %1597 = vrcp.f32 %v869_v5 }
 0x338   : > { %v1586_v7 = vpop.eup %1585 }
 0x339   : > { %v874_v9 = vadd.f32 1.0, %v1586_v7  ;;  %v1588_v10 = vpop.eup %1587 }
 0x33a   : > { %v1590_v11 = vpop.eup %1589  ;;  %v871_v12 = vadd.f32 1.0, %v1588_v10 }
 0x33b   : > { %1599 = vrcp.f32 %v874_v9  ;;  %v872_v16 = vadd.f32 1.0, %v1590_v11 }
 0x33c   : > { %1601 = vrcp.f32 %v870_v8 }
 0x33d   : > { %1603 = vrcp.f32 %v871_v12 }
 0x33e   : > { %v1592_v14 = vpop.eup %1591  ;;  %1605 = vrcp.f32 %v872_v16 }
 0x33f   : > { %1350 = vmatmul.mubr.msk.f32.vlgmr.msra.gmra.mxu0 %vm895_vm4, %v1592_v14  ;;  %v1594_v15 = vpop.eup %1593 }
 0x340   : > { %1131 = vmatprep.mubr.f32.mxu0 %v1671_v48  ;;  %v1596_v17 = vpop.eup %1595  ;;  %v873_v18 = vadd.f32 1.0, %v1594_v15 }
 0x342   : > { %v1598_v19 = vpop.eup %1597  ;;  %1607 = vrcp.f32 %v873_v18 }
 0x343   : > { %1351 = vmatmul.mubr.msk.f32.gmra.mxu0 %vm895_vm4, %v1596_v17 }
 0x344   : > { %1137 = vmatprep.mubr.f32.mxu0 %v1671_v48 }
 0x347   : > { %1352 = vmatmul.mubr.msk.f32.gmra.mxu0 %vm895_vm4, %v1598_v19 }
 0x348   : > { %v1600_v20 = vpop.eup %1599  ;;  %1143 = vmatprep.mubr.f32.mxu0 %v1671_v48 }
 0x349   : > { %1357 = vmatmul.mubr.msk.f32.vlgmr.msra.gmra.mxu1 %vm895_vm4, %v1600_v20  ;;  %v1602_v21 = vpop.eup %1601 }
 0x34a   : > { %v1604_v22 = vpop.eup %1603 }
 0x34b   : > { %1353 = vmatmul.mubr.msk.f32.gmra.mxu0 %vm895_vm4, %v1602_v21  ;;  %v1606_v23 = vpop.eup %1605 }
 0x34c   : > { %1149 = vmatprep.mubr.f32.mxu0 %v1671_v48 }
 0x34f   : > { %1354 = vmatmul.mubr.msk.f32.gmra.mxu0 %vm895_vm4, %v1604_v22  ;;  %v1608_v24 = vpop.eup %1607 }
 0x350   : > { %1155 = vmatprep.mubr.f32.mxu0 %v1671_v48 }
 0x353   : > { %1355 = vmatmul.mubr.msk.f32.gmra.mxu0 %vm895_vm4, %v1606_v23 }
 0x354   : > { %1161 = vmatprep.mubr.f32.mxu0 %v1671_v48 }
 0x357   : > { %1356 = vmatmul.mubr.msk.f32.gmra.mxu0 %vm895_vm4, %v1608_v24 }
 0x38c   : > { %v986_v25 = vpop.f32.mrf.mxu1 }
 0x38e   : > { %v988_v26 = vpop.f32.mrf.mxu1 }
 0x390   : > { %v992_v27 = vpop.f32.mrf.mxu1 }
 0x392   : > { %v994_v28 = vpop.f32.mrf.mxu1 }
 0x394   : > { %v998_v29 = vpop.f32.mrf.mxu1 }
 0x396   : > { %v1000_v30 = vpop.f32.mrf.mxu1 }
 0x398   : > { %v1004_v31 = vpop.f32.mrf.mxu1 }
 0x39a   : > { %v1006_v32 = vpop.f32.mrf.mxu1 }
 0x39c   : > { %v1010_v49 = vpop.f32.mrf.mxu1 }
 0x39e   : > { %v1012_v50 = vpop.f32.mrf.mxu1 }
 0x3a0   : > { %v1016_v51 = vpop.f32.mrf.mxu1 }
 0x3a2   : > { %v1018_v52 = vpop.f32.mrf.mxu1 }
 0x3a4   : > { %v1022_v53 = vpop.f32.mrf.mxu1 }
 0x3a6   : > { %v2070_v54 = vpop.f32.mrf.mxu1 }
 0x3a8   : > { %v1028_v60 = vpop.f32.mrf.mxu1 }
 0x3ff   : > { %v1127_v48 = vpop.f32.mrf.mxu0 }
 0x400   : > { %v1174_v55 = vmul.f32 %v1127_v48, %v986_v25 }
 0x401   : > { %v1129_v56 = vpop.f32.mrf.mxu0 }
 0x402   : > { %v1190_v57 = vmul.f32 %v1174_v55, %v1872_v33  ;;  %v1175_v58 = vmul.f32 %v1129_v56, %v988_v26  ;;  %v1030_v33 = vpop.f32.mrf.mxu1 }
 0x403   : > { %v1133_v59 = vpop.f32.mrf.mxu0 }
 0x404   : > { %1206 = vst [vmem:[%s2073_s19] sm:$0xff] %v1190_v57  ;;  %v1191_v61 = vmul.f32 %v1175_v58, %v1811_v13  ;;  %v1176_v62 = vmul.f32 %v1133_v59, %v992_v27 }
 0x405   : > { %v1135_v63 = vpop.f32.mrf.mxu0 }
 0x406   : > { %1207 = vst [vmem:[%s2073_s19 + $0x8] sm:$0xff] %v1191_v61  ;;  %v1192_v0 = vmul.f32 %v1176_v62, %v1880_v35  ;;  %v1177_v1 = vmul.f32 %v1135_v63, %v994_v28 }
 0x407   : > { %v1139_v2 = vpop.f32.mrf.mxu0 }
 0x408   : > { %1208 = vst [vmem:[%s2073_s19 + $0x10] sm:$0xff] %v1192_v0  ;;  %v1193_v3 = vmul.f32 %v1177_v1, %v1875_v34  ;;  %v1178_v4 = vmul.f32 %v1139_v2, %v998_v29 }
 0x409   : > { %v1141_v5 = vpop.f32.mrf.mxu0  ;;  %v1169_v6 = vpop.f32.mrf.mxu1 }
 0x40a   : > { %1209 = vst [vmem:[%s2073_s19 + $0x18] sm:$0xff] %v1193_v3  ;;  %v1194_v13 = vmul.f32 %v1178_v4, %v1888_v37  ;;  %v1179_v7 = vmul.f32 %v1141_v5, %v1000_v30  ;;  %v1188_v8 = vmul.f32 %v1169_v6, %v1028_v60 }
 0x40b   : > { %v1145_v9 = vpop.f32.mrf.mxu0  ;;  %v1171_v35 = vpop.f32.mrf.mxu1 }
 0x40c   : > { %1210 = vst [vmem:[%s2073_s19 + $0x20] sm:$0xff] %v1194_v13  ;;  %v1195_v10 = vmul.f32 %v1179_v7, %v1883_v36  ;;  %v1204_v34 = vmul.f32 %v1188_v8, %v1928_v47  ;;  %v1180_v11 = vmul.f32 %v1145_v9, %v1004_v31  ;;  %v1189_v12 = vmul.f32 %v1171_v35, %v1030_v33 }
 0x40d   : > { %v1147_v14 = vpop.f32.mrf.mxu0 }
 0x40e   : > { %1211 = vst [vmem:[%s2073_s19 + $0x28] sm:$0xff] %v1195_v10  ;;  %1220 = vst [vmem:[%s2073_s19 + $0x70] sm:$0xff] %v1204_v34  ;;  %v1196_v37 = vmul.f32 %v1180_v11, %v1896_v39  ;;  %v1205_v15 = vmul.f32 %v1189_v12, %v1923_v46  ;;  %v1181_v16 = vmul.f32 %v1147_v14, %v1006_v32 }
 0x40f   : > { %v1151_v17 = vpop.f32.mrf.mxu0 }
 0x410   : > { %1212 = vst [vmem:[%s2073_s19 + $0x30] sm:$0xff] %v1196_v37  ;;  %1221 = vst [vmem:[%s2073_s19 + $0x78] sm:$0xff] %v1205_v15  ;;  %v1197_v36 = vmul.f32 %v1181_v16, %v1891_v38  ;;  %v1182_v18 = vmul.f32 %v1151_v17, %v1010_v49 }
 0x411   : > { %v1153_v47 = vpop.f32.mrf.mxu0 }
 0x412   : > { %1213 = vst [vmem:[%s2073_s19 + $0x38] sm:$0xff] %v1197_v36  ;;  %v1198_v19 = vmul.f32 %v1182_v18, %v1904_v41  ;;  %v1183_v20 = vmul.f32 %v1153_v47, %v1012_v50 }
 0x413   : > { %v1157_v39 = vpop.f32.mrf.mxu0 }
 0x414   : > { %1214 = vst [vmem:[%s2073_s19 + $0x40] sm:$0xff] %v1198_v19  ;;  %v1199_v46 = vmul.f32 %v1183_v20, %v1899_v40  ;;  %v1184_v21 = vmul.f32 %v1157_v39, %v1016_v51 }
 0x415   : > { %v1159_v22 = vpop.f32.mrf.mxu0 }
 0x416   : > { %1215 = vst [vmem:[%s2073_s19 + $0x48] sm:$0xff] %v1199_v46  ;;  %v1200_v23 = vmul.f32 %v1184_v21, %v1912_v43  ;;  %v1185_v38 = vmul.f32 %v1159_v22, %v1018_v52 }
 0x417   : > { %v1163_v24 = vpop.f32.mrf.mxu0 }
 0x418   : > { %1216 = vst [vmem:[%s2073_s19 + $0x50] sm:$0xff] %v1200_v23  ;;  %v1201_v25 = vmul.f32 %v1185_v38, %v1907_v42  ;;  %v1186_v41 = vmul.f32 %v1163_v24, %v1022_v53 }
 0x419   : > { %v1165_v26 = vpop.f32.mrf.mxu0 }
 0x41a   : > { %1217 = vst [vmem:[%s2073_s19 + $0x58] sm:$0xff] %v1201_v25  ;;  %v1202_v40 = vmul.f32 %v1186_v41, %v1920_v45  ;;  %v1187_v27 = vmul.f32 %v1165_v26, %v2070_v54 }
 0x41c   : > { %1218 = vst [vmem:[%s2073_s19 + $0x60] sm:$0xff] %v1202_v40  ;;  %v1203_v42 = vmul.f32 %v1187_v27, %v1915_v44 }
 0x41e   : > { %1219 = vst [vmem:[%s2073_s19 + $0x68] sm:$0xff] %v1203_v42 }
 0x41f   : > { %1622 = shalt.err (!%p1619_p3)
}
 0x420   : > { %s1623_s22 = scalar_lea.hbm %s2109_s16, 2048  ;;  %s1627_s9 = scalar_lea.hbm %s2165_s7, 4096 }
 0x421   : > { %p1624_p4 = scmp.ne.s32.totalorder %s2109_s16, %s1623_s22  ;;  %p1628_p9 = scmp.lt.s32.totalorder %s2109_s16, %s2165_s7 }
 0x422   : > { %p1629_p10 = scmp.lt.s32.totalorder %s1627_s9, %s1623_s22 }
 0x423   : > { %p1625_p7 = pnand %p1624_p4, %p1755_p5 }
 0x424   : > { %p1630_p11 = por %p1629_p10, %p1628_p9 }
 0x425   : > { %p1626_p8 = pneg %p1625_p7 }
 0x427   : > { %p1631_p12 = pnand %p1630_p11, %p1626_p8 }
 0x429   : > { %1634 = shalt.err (!%p1631_p12)
}
 0x42a   : > { %s1675_s29 = smov 256   ;;  %s1676_s15 = smov 16  }
 0x42b   : > { %1501 = dma.vmem_to_hbm [thread:$0]  (%p1755_p5), %s2111_s14, 2048, %s2109_s16, %s2118_s28, %s1675_s29, %s1675_s29, %s1676_s15  }
 0x42c PF: > { %p1507_p13 = scmp.ge.s32.totalorder %s1669_s27, 2  ;;  %s1252_s17 = sand.u32 1, %s1657_s24  }
 0x42d   : > { %s1253_s18 = scalar_lea.sflag [#allocation3], %s1252_s17 }
 0x42e   : > { %p1504_p0 = pnand %p1507_p13, %p1759_p6 }
 0x430   : > { %p1505_p1 = pneg %p1504_p0 }
 0x432   : > { %1652 = dma.done.wait (%p1505_p1), %s1253_s18, 2048  }
 0x433   : > { %1654 = vsyncadd (%p1505_p1), %s1253_s18, 4294965248  ;;  %p17_p2 = scmp.ge.s32.totalorder %s1742_s30, 4   ;;  %s2168_s24 = smov %s1661_s25 }
 0x434   : > { %s2169_s25 = smov %s1665_s26  ;;  %s2170_s26 = smov %s1753_s10 }
 0x435   : > { %s2171_s27 = smov %s1742_s30  ;;  %19 = sbr.rel (!%p17_p2) target bundleno = 3 (0x3), region = 83 }
 0x43a   :  { %1258 = vsyncpa [#allocation3], 1 }
 0x43b   :  { %1260 = vsyncpa [#allocation3 + $0x1], 1 }

</bundles_post_ra>
